<compile_context>
chip_gen: v7x
topology: tpu7x:2x2x1
jax: 0.10.0
libtpu: 0.0.40
codegen_flags: <defaults>
</compile_context>

<pallas_src>
import jax
import jax.numpy as jnp
from jax.experimental import pallas as pl
from jax.experimental.pallas import tpu as pltpu


def _round_up(x, m):
    return ((x + m - 1) // m) * m


# ----------------------------------------------------------------------------
# Kernels
# ----------------------------------------------------------------------------
def _conv1d_kernel_fullk(x_ref, w_ref, b_ref, o_ref):
    """Whole reduction strip resident in VMEM: one MXU call, bias + cast inline."""
    acc = jnp.dot(x_ref[...], w_ref[...], preferred_element_type=jnp.float32)
    o_ref[...] = (acc + b_ref[...].astype(jnp.float32)).astype(o_ref.dtype)


def _conv1d_kernel_kloop(x_ref, w_ref, b_ref, o_ref, acc_ref):
    """K-last reduction with a resident f32 accumulator; bias folded into init."""
    k = pl.program_id(2)

    @pl.when(k == 0)
    def _init():
        acc_ref[...] = jnp.broadcast_to(
            b_ref[...].astype(jnp.float32), acc_ref.shape
        )

    acc_ref[...] += jnp.dot(
        x_ref[...], w_ref[...], preferred_element_type=jnp.float32
    )

    @pl.when(k == pl.num_programs(2) - 1)
    def _finalize():
        o_ref[...] = acc_ref[...].astype(o_ref.dtype)


# ----------------------------------------------------------------------------
# Tile selection (VMEM-budgeted, generation-safe: budget <= 28 MiB per core)
# ----------------------------------------------------------------------------
def _footprint(tm, tn, tk, in_itemsize, out_itemsize, full_k):
    b = 2 * (tm * tk + tk * tn) * in_itemsize      # double-buffered x & w tiles
    b += 2 * tm * tn * out_itemsize                # double-buffered output tile
    b += 2 * tn * 4                                # bias row
    if not full_k:
        b += tm * tn * 4                           # f32 accumulator scratch
    return b


def _choose_tiles(m, nx, nf, in_itemsize, out_itemsize, budget):
    sub = 16 if in_itemsize < 4 else 8
    tm = min(512, _round_up(m, sub))
    tn = min(512, _round_up(nf, 128))
    k_full = _round_up(nx, 128)

    # Prefer collapsing the K axis entirely (GPT-2 nx=768/3072 at bf16 fits).
    if _footprint(tm, tn, k_full, in_itemsize, out_itemsize, True) <= budget:
        return tm, tn, k_full, True

    tk = min(1024, k_full)
    while tk > 128 and _footprint(tm, tn, tk, in_itemsize, out_itemsize, False) > budget:
        tk //= 2
    while (_footprint(tm, tn, tk, in_itemsize, out_itemsize, False) > budget
           and max(tm, tn) > 128):
        if tm >= tn:
            tm = max(128, tm // 2)
        else:
            tn = max(128, tn // 2)
    return tm, tn, tk, False


# ----------------------------------------------------------------------------
# Wrapper
# ----------------------------------------------------------------------------
def conv1d(x, weight, bias, *, compute_dtype=jnp.bfloat16,
           tm=None, tn=None, tk=None, vmem_budget_bytes=28 << 20):
    """x: (..., nx), weight: (nx, nf), bias: (nf,) -> (..., nf).

    compute_dtype=None keeps the input dtype (bit-exact f32 path);
    the default bfloat16 keeps f32 accumulation and an f32 bias add.
    """
    nx, nf = weight.shape
    lead = x.shape[:-1]
    m = 1
    for d in lead:
        m *= d

    out_dtype = x.dtype
    if compute_dtype is not None:
        x = x.astype(compute_dtype)
        weight = weight.astype(compute_dtype)

    x2d = x.reshape(m, nx)
    in_itemsize = jnp.dtype(x2d.dtype).itemsize
    out_itemsize = jnp.dtype(out_dtype).itemsize
    sub = 16 if in_itemsize < 4 else 8
    k128 = _round_up(nx, 128)

    if tm is None and tn is None and tk is None:
        tm, tn, tk, full_k = _choose_tiles(
            m, nx, nf, in_itemsize, out_itemsize, vmem_budget_bytes)
    else:
        tm = min(tm or 512, _round_up(m, sub))
        tn = min(tn or 512, _round_up(nf, 128))
        tk = min(tk or 1024, k128)
        full_k = tk >= k128
        if full_k:
            tk = k128

    m_p = _round_up(m, tm)
    nf_p = _round_up(nf, tn)
    nx_p = _round_up(nx, tk)

    # NOTE: for prefill-sized activations prefer seq lengths that are multiples
    # of tm so this pad (a full HBM copy of x) is a no-op.
    if (m_p, nx_p) != (m, nx):
        x2d = jnp.pad(x2d, ((0, m_p - m), (0, nx_p - nx)))  # zero-pad K: no-op math
    w2d = weight
    if (nx_p, nf_p) != (nx, nf):
        w2d = jnp.pad(weight, ((0, nx_p - nx), (0, nf_p - nf)))
    b2d = bias.astype(jnp.float32).reshape(1, nf)
    if nf_p != nf:
        b2d = jnp.pad(b2d, ((0, 0), (0, nf_p - nf)))

    gi, gj, gk = m_p // tm, nf_p // tn, nx_p // tk

    if full_k:
        grid = (gi, gj)
        kernel = _conv1d_kernel_fullk
        in_specs = [
            pl.BlockSpec((tm, tk), lambda i, j: (i, 0)),
            pl.BlockSpec((tk, tn), lambda i, j: (0, j)),
            pl.BlockSpec((1, tn), lambda i, j: (0, j)),
        ]
        out_specs = pl.BlockSpec((tm, tn), lambda i, j: (i, j))
        scratch = []
        dims = ("parallel", "parallel")
    else:
        grid = (gi, gj, gk)
        kernel = _conv1d_kernel_kloop
        in_specs = [
            pl.BlockSpec((tm, tk), lambda i, j, k: (i, k)),
            pl.BlockSpec((tk, tn), lambda i, j, k: (k, j)),
            pl.BlockSpec((1, tn), lambda i, j, k: (0, j)),
        ]
        out_specs = pl.BlockSpec((tm, tn), lambda i, j, k: (i, j))
        scratch = [pltpu.VMEM((tm, tn), jnp.float32)]
        dims = ("parallel", "parallel", "arbitrary")

    footprint = _footprint(tm, tn, tk, in_itemsize, out_itemsize, full_k)
    # Raise the scoped-VMEM cap (16 MiB default on v5e) but stay within the
    # smallest physical VMEM of the target generations (v7x: 64 MiB / core).
    vmem_limit = int(min(64 << 20, max(32 << 20, footprint + (8 << 20))))

    # Grid-dependent traffic (re-reads included), padded dims for consistency.
    cost = pl.CostEstimate(
        flops=2 * m_p * nx_p * nf_p,
        transcendentals=0,
        bytes_accessed=(
            gj * m_p * nx_p * in_itemsize        # x re-read once per N tile
            + gi * nx_p * nf_p * in_itemsize     # w re-read once per M tile
            + m_p * nf_p * out_itemsize          # output written once
            + gi * nf_p * 4                      # bias re-read once per M tile
        ),
    )

    out2d = pl.pallas_call(
        kernel,
        out_shape=jax.ShapeDtypeStruct((m_p, nf_p), out_dtype),
        grid_spec=pltpu.PrefetchScalarGridSpec(
            num_scalar_prefetch=0,
            grid=grid,
            in_specs=in_specs,
            out_specs=out_specs,
            scratch_shapes=scratch,
        ),
        compiler_params=pltpu.CompilerParams(
            dimension_semantics=dims,
            vmem_limit_bytes=vmem_limit,
        ),
        cost_estimate=cost,
    )(x2d, w2d, b2d)

    out2d = out2d[:m, :nf]
    return out2d.reshape(lead + (nf,))


# ----------------------------------------------------------------------------
# Demo / correctness check
# ----------------------------------------------------------------------------
if __name__ == "__main__":
    key = jax.random.PRNGKey(0)
    batch, seq, nx, nf = 2, 8, 32, 64

    kx, kw, kb = jax.random.split(key, 3)
    # Params matching Conv1D.__init__ scale (weight ~ N(0, 0.02)); bias made
    # nonzero here so the bias-add path is actually exercised.
    weight = 0.02 * jax.random.normal(kw, (nx, nf), dtype=jnp.float32)
    bias = 0.1 * jax.random.normal(kb, (nf,), dtype=jnp.float32)
    x = jax.random.normal(kx, (batch, seq, nx), dtype=jnp.float32)

    y_ref = (x.reshape(-1, nx) @ weight + bias).reshape(batch, seq, nf)

    # 1) Default fast path: bf16 operands, f32 accumulation, full-K kernel.
    y_bf16 = conv1d(x, weight, bias)
    jax.block_until_ready(y_bf16)
    assert y_bf16.shape == (batch, seq, nf)
    assert y_bf16.dtype == x.dtype
    assert jnp.allclose(y_bf16, y_ref, atol=3e-2, rtol=3e-2)

    # 2) Bit-exact f32 path (torch.addmm parity), full-K kernel.
    y_f32 = conv1d(x, weight, bias, compute_dtype=None)
    jax.block_until_ready(y_f32)
    assert jnp.allclose(y_f32, y_ref, atol=1e-5, rtol=1e-5)

    # 3) Exercise the K-loop fallback kernel (forced small tk -> 2 K steps).
    kx2, kw2, kb2 = jax.random.split(jax.random.PRNGKey(0), 3)
    nx2, nf2 = 256, 256
    x2 = jax.random.normal(kx2, (batch, seq, nx2), dtype=jnp.float32)
    w2 = 0.02 * jax.random.normal(kw2, (nx2, nf2), dtype=jnp.float32)
    b2 = 0.1 * jax.random.normal(kb2, (nf2,), dtype=jnp.float32)
    y2 = conv1d(x2, w2, b2, compute_dtype=None, tm=16, tn=128, tk=128)
    jax.block_until_ready(y2)
    y2_ref = (x2.reshape(-1, nx2) @ w2 + b2).reshape(batch, seq, nf2)
    assert jnp.allclose(y2, y2_ref, atol=1e-5, rtol=1e-5)

    print("KERNEL_OK")
</pallas_src>

<mosaic_0001>
module attributes {stable_mosaic.version = 11 : i64} {
  func.func @_conv1d_kernel_fullk(%arg0: i32, %arg1: i32, %arg2: memref<16x128xbf16, #tpu.memory_space<vmem>>, %arg3: memref<128x128xbf16, #tpu.memory_space<vmem>>, %arg4: memref<1x128xf32, #tpu.memory_space<vmem>>, %arg5: memref<16x128xf32, #tpu.memory_space<vmem>>) attributes {dimension_semantics = [#tpu.dimension_semantics<parallel>, #tpu.dimension_semantics<parallel>], iteration_bounds = array<i64: 1, 1>, scalar_prefetch = 0 : i64, scratch_operands = 0 : i64, tpu.core_type = #tpu.core_type<tc>, window_params = [{transform_indices = @transform_0, window_bounds = array<i64: 16, 128>}, {transform_indices = @transform_1, window_bounds = array<i64: 128, 128>}, {transform_indices = @transform_2, window_bounds = array<i64: 1, 128>}, {transform_indices = @transform_3, window_bounds = array<i64: 16, 128>}]} {
    %c0 = arith.constant 0 : index
    %c0_0 = arith.constant 0 : index
    %0 = vector.load %arg2[%c0, %c0_0] : memref<16x128xbf16, #tpu.memory_space<vmem>>, vector<16x128xbf16>
    %c0_1 = arith.constant 0 : index
    %c0_2 = arith.constant 0 : index
    %1 = vector.load %arg3[%c0_1, %c0_2] : memref<128x128xbf16, #tpu.memory_space<vmem>>, vector<128x128xbf16>
    %cst = arith.constant dense<0.000000e+00> : vector<16x128xf32>
    %2 = tpu.matmul %0, %1, %cst {dimension_numbers = #tpu.dot_dimension_numbers<[1], [0], [0], [1], [0, 0, 1, 1], [], []>} : vector<16x128xbf16>, vector<128x128xbf16>, vector<16x128xf32> -> vector<16x128xf32>
    %c0_3 = arith.constant 0 : index
    %c0_4 = arith.constant 0 : index
    %3 = vector.load %arg4[%c0_3, %c0_4] : memref<1x128xf32, #tpu.memory_space<vmem>>, vector<1x128xf32>
    %4 = vector.broadcast %3 : vector<1x128xf32> to vector<16x128xf32>
    %5 = arith.addf %2, %4 : vector<16x128xf32>
    %c0_5 = arith.constant 0 : index
    %c0_6 = arith.constant 0 : index
    %6 = vector.load %arg5[%c0_5, %c0_6] : memref<16x128xf32, #tpu.memory_space<vmem>>, vector<16x128xf32>
    tpu.vector_store %arg5[%c0_5, %c0_6], %5 {strides = array<i32>} : memref<16x128xf32, #tpu.memory_space<vmem>>, vector<16x128xf32>,
    return
  }
  func.func @transform_0(%arg0: i32, %arg1: i32) -> (i32, i32) {
    %c0_i32 = arith.constant 0 : i32
    %c0_i32_0 = arith.constant 0 : i32
    return %arg0, %c0_i32 : i32, i32
  }
  func.func @transform_1(%arg0: i32, %arg1: i32) -> (i32, i32) {
    %c0_i32 = arith.constant 0 : i32
    %c0_i32_0 = arith.constant 0 : i32
    return %c0_i32, %arg1 : i32, i32
  }
  func.func @transform_2(%arg0: i32, %arg1: i32) -> (i32, i32) {
    %c0_i32 = arith.constant 0 : i32
    %c0_i32_0 = arith.constant 0 : i32
    return %c0_i32, %arg1 : i32, i32
  }
  func.func @transform_3(%arg0: i32, %arg1: i32) -> (i32, i32) {
    %c0_i32 = arith.constant 0 : i32
    return %arg0, %arg1 : i32, i32
  }
}

</mosaic_0001>

<bundles_post_ra>
// kernel: tpu_custom_call.1
= control target key start
LH: loop header
LB: loop body
LE: loop exit
PB: predicated region body
PF: predicated region fallthrough
CT: control target
= control target key end

     0   :  { %8 = vsyncpa [#allocation3], 0  ;;  %s381_s0 = inlined_call_operand.hbm [shape: bf16[16,128], index: 0, kind: input, shape index: {}]   ;;  %s382_s1 = inlined_call_operand.hbm [shape: bf16[128,128], index: 1, kind: input, shape index: {}]   ;;  %s383_s2 = inlined_call_operand.vmem [shape: f32[1,128], index: 2, kind: input, shape index: {}]   ;;  %s384_s3 = inlined_call_operand.hbm [shape: f32[16,128], index: 3, kind: output, shape index: {}]  }
   0x1   :  { %9 = vsyncpa [#allocation6], 0 }
   0x2   :  { %10 = vsyncpa [#allocation4], 0  ;;  %s313_s12 = smov [#allocation2]   ;;  %s241_s16 = scalar_lea.hbm %s381_s0, 128 }
   0x3   :  { %s16_s13 = sshll.u32 %s313_s12, 4  ;;  %p242_p0 = scmp.ne.s32.totalorder %s381_s0, %s241_s16  ;;  %s17_s13 = int_to_ptr.vmem [resolvable:$true] %s16_s13 }
   0x4   :  { %p245_p1 = scmp.lt.u32.totalorder %s241_s16, %s381_s0 }
   0x6   :  { %p247_p2 = pnand %p245_p1, %p242_p0 }
   0x8   :  { %250 = shalt.err (!%p247_p2)
}
   0x9   :  { %s251_s21 = scalar_lea.vmem %s17_s13, 128  ;;  %p256_p4 = scmp.lt.s32.totalorder %s17_s13, %s17_s13 }
   0xa   :  { %p252_p3 = scmp.ne.s32.totalorder %s17_s13, %s251_s21  ;;  %p257_p5 = scmp.lt.s32.totalorder %s251_s21, %s251_s21 }
   0xc   :  { %p258_p6 = por %p257_p5, %p256_p4 }
   0xe   :  { %p259_p7 = pnand %p258_p6, %p252_p3 }
  0x10   :  { %262 = shalt.err (!%p259_p7)
}
  0x11   :  { %s314_s22 = smov 64   ;;  %s315_s23 = smov 4  }
  0x12   :  { %22 = dma.hbm_to_vmem [thread:$0]  %s381_s0, 128, %s17_s13, [#allocation3], %s314_s22, %s314_s22, %s315_s23  }
  0x13   :  { %s316_s26 = smov [#allocation5]   ;;  %s263_s30 = scalar_lea.hbm %s382_s1, 1024 }
  0x14   :  { %s28_s27 = sshll.u32 %s316_s26, 4  ;;  %p264_p8 = scmp.ne.s32.totalorder %s382_s1, %s263_s30  ;;  %s29_s27 = int_to_ptr.vmem [resolvable:$true] %s28_s27 }
  0x15   :  { %p267_p9 = scmp.lt.u32.totalorder %s263_s30, %s382_s1 }
  0x17   :  { %p269_p10 = pnand %p267_p9, %p264_p8 }
  0x19   :  { %272 = shalt.err (!%p269_p10)
}
  0x1a   :  { %s273_s8 = scalar_lea.vmem %s29_s27, 1024  ;;  %p278_p12 = scmp.lt.s32.totalorder %s29_s27, %s29_s27 }
  0x1b   :  { %p274_p11 = scmp.ne.s32.totalorder %s29_s27, %s273_s8  ;;  %p279_p13 = scmp.lt.s32.totalorder %s273_s8, %s273_s8 }
  0x1d   :  { %p280_p0 = por %p279_p13, %p278_p12 }
  0x1f   :  { %p281_p1 = pnand %p280_p0, %p274_p11 }
  0x21   :  { %284 = shalt.err (!%p281_p1)
}
  0x22   :  { %34 = dma.hbm_to_vmem [thread:$0]  %s382_s1, 1024, %s29_s27, [#allocation6], %s314_s22, %s314_s22, %s315_s23  }
  0x23   :  { %307 = dma.done.wait [#allocation3], 128  }
  0x24   :  { %308 = vsyncadd [#allocation3], 4294967168 }
  0x25   :  { %309 = dma.done.wait [#allocation6], 1024  }
  0x26   :  { %310 = vsyncadd [#allocation6], 4294966272  ;;  %v317_v0 = vmov 0.0   ;;  %vm318_vm0 = vmmov 0   ;;  %v232_v1 = vld [vmem:[#allocation5] sm:$0xff]   ;;  %v233_v2 = vld [vmem:[#allocation5 + $0x8] sm:$0xff]  }
  0x27   :  { %203 = vmatprep.subr.bf16.mxu0 %v317_v0  ;;  %219 = vmatprep.mubr.msk.bf16.mxu0 %vm318_vm0, %v317_v0  ;;  %v234_v3 = vld [vmem:[#allocation5 + $0x10] sm:$0xff]   ;;  %v235_v4 = vld [vmem:[#allocation5 + $0x18] sm:$0xff]   ;;  %v236_v5 = vld [vmem:[#allocation5 + $0x20] sm:$0xff]   ;;  %s319_s11 = smov [#allocation7]  }
  0x28   :  { %204 = vmatpush3.bf16.msra.mxu0 %v232_v1  ;;  %v237_v6 = vld [vmem:[#allocation5 + $0x28] sm:$0xff]   ;;  %v238_v7 = vld [vmem:[#allocation5 + $0x30] sm:$0xff]   ;;  %v239_v8 = vld [vmem:[#allocation5 + $0x38] sm:$0xff]   ;;  %s171_s12 = sshll.u32 %s319_s11, 4  ;;  %s172_s12 = int_to_ptr.vmem [resolvable:$true] %s171_s12 }
  0x29   :  { %205 = vmatprep.subr.bf16.mxu0 %v317_v0  ;;  %v240_v9 = vld [vmem:[#allocation2] sm:$0xff]   ;;  %s285_s13 = scalar_lea.vmem %s172_s12, 256  ;;  %p290_p3 = scmp.lt.s32.totalorder %s172_s12, %s172_s12 }
  0x2a   :  { %v184_v10 = vld [vmem:[%s383_s2] ss:$0 sm:$0xff]  ;;  %p286_p2 = scmp.ne.s32.totalorder %s172_s12, %s285_s13  ;;  %p291_p4 = scmp.lt.s32.totalorder %s285_s13, %s285_s13 }
  0x2c   :  { %206 = vmatpush3.bf16.msra.mxu0 %v233_v2  ;;  %p292_p5 = por %p291_p4, %p290_p3 }
  0x2d   :  { %207 = vmatprep.subr.bf16.mxu0 %v317_v0 }
  0x2e   :  { %p293_p6 = pnand %p292_p5, %p286_p2 }
  0x30   :  { %208 = vmatpush3.bf16.msra.mxu0 %v234_v3 }
  0x31   :  { %209 = vmatprep.subr.bf16.mxu0 %v317_v0 }
  0x34   :  { %210 = vmatpush3.bf16.msra.mxu0 %v235_v4 }
  0x35   :  { %211 = vmatprep.subr.bf16.mxu0 %v317_v0 }
  0x38   :  { %212 = vmatpush3.bf16.msra.mxu0 %v236_v5 }
  0x39   :  { %213 = vmatprep.subr.bf16.mxu0 %v317_v0 }
  0x3c   :  { %214 = vmatpush3.bf16.msra.mxu0 %v237_v6 }
  0x3d   :  { %215 = vmatprep.subr.bf16.mxu0 %v317_v0 }
  0x40   :  { %216 = vmatpush3.bf16.msra.mxu0 %v238_v7 }
  0x41   :  { %217 = vmatprep.subr.bf16.mxu0 %v317_v0 }
  0x44   :  { %218 = vmatpush3.bf16.msra.mxu0 %v239_v8 }
  0x47   :  { %220 = vmatmul.mubr.bf16.vlgmr.msra.gmra.mrb[0].mxu0 %v240_v9 }
 0x11a   :  { %v157_v11 = vpop.f32.mrb[0].mxu0 }
 0x11b   :  { %v158_v12 = vadd.f32 %v184_v10, %v157_v11  ;;  %v221_v13 = vpop.f32.mrb[1].mxu0 }
 0x11c   :  { %v160_v14 = vpop.f32.mrb[2].mxu0 }
 0x11d   :  { %164 = vst [vmem:[#allocation7] sm:$0xff] %v158_v12  ;;  %v161_v15 = vadd.f32 %v184_v10, %v160_v14  ;;  %v222_v16 = vpop.f32.mrb[3].mxu0 }
 0x11f   :  { %165 = vst [vmem:[#allocation7 + $0x8] sm:$0xff] %v161_v15 }
 0x120   :  { %296 = shalt.err (!%p293_p6)
}
 0x121   :  { %s297_s15 = scalar_lea.hbm %s384_s3, 256 }
 0x122   :  { %p298_p7 = scmp.ne.s32.totalorder %s384_s3, %s297_s15  ;;  %p301_p8 = scmp.lt.u32.totalorder %s297_s15, %s384_s3 }
 0x124   :  { %p303_p9 = pnand %p301_p8, %p298_p7 }
 0x126   :  { %306 = shalt.err (!%p303_p9)
}
 0x127   :  { %s320_s20 = smov 128   ;;  %s321_s21 = smov 8  }
 0x128   :  { %177 = dma.vmem_to_hbm [thread:$0]  %s172_s12, 256, %s384_s3, [#allocation4], %s320_s20, %s320_s20, %s321_s21  }
 0x129   :  { %311 = dma.done.wait [#allocation4], 256  }
 0x12a   :  { %312 = vsyncadd [#allocation4], 4294967040 }
 0x12b   :  { %181 = vsyncpa [#allocation3], 1 }
 0x12c   :  { %182 = vsyncpa [#allocation6], 1 }
 0x12d   :  { %183 = vsyncpa [#allocation4], 1 }

</bundles_post_ra>
